<compile_context>
chip_gen: v7x
topology: tpu7x:2x2x1
jax: 0.10.0
libtpu: 0.0.40
codegen_flags: <defaults>
</compile_context>

<pallas_src>
import jax
import jax.numpy as jnp
from jax.experimental import pallas as pl
from jax.experimental.pallas import tpu as pltpu

LANES = 128
SUBLANES = 8
_TARGET_BLOCK_ROWS = 1024          # sweep-informed default (~85% of HBM roofline)


def _sumsq_kernel(pred_ref, tgt_ref, acc_ref):
    """Accumulate per-(sublane,lane) partial sums of squared residuals.

    Grid = (nsplit, steps).  Axis 0 is 'parallel' (independent partial
    accumulators, one output block each -> shardable across v7x's 2 TCs).
    Axis 1 is 'arbitrary' (reduction); the output block keeps the same block
    index across it, so it stays VMEM-resident and acts as the accumulator.
    """
    i = pl.program_id(1)

    @pl.when(i == 0)
    def _init():
        acc_ref[...] = jnp.zeros_like(acc_ref)

    # Hot path: elementwise residual (VPU) + vreg-granular partial sums.
    # The reshape groups rows into whole (8,128) vregs, so the axis-0 sum is a
    # chain of plain vector adds — no per-step cross-lane/XLU reduction and no
    # scalar dependency chain across grid iterations.
    d = pred_ref[...].astype(jnp.float32) - tgt_ref[...].astype(jnp.float32)
    partial = jnp.sum((d * d).reshape(-1, SUBLANES, LANES), axis=0)
    acc_ref[...] += partial[None, :, :]


def _round_up(x: int, m: int) -> int:
    return -(-x // m) * m


def _choose_block_rows(rows: int, itemsize: int) -> int:
    # dtype-aware sublane packing: f32 -> 8 rows/vreg, bf16 -> 16, int8/fp8 -> 32
    pack = {4: SUBLANES, 2: 2 * SUBLANES, 1: 4 * SUBLANES}.get(itemsize, SUBLANES)
    return min(_TARGET_BLOCK_ROWS, max(pack, _round_up(rows, pack)))


class BaseLossPallas:
    """JAX/Pallas counterpart of BaseLoss (concrete weighted-MSE residual)."""
    # TODO(synk): BaseLoss.forward raises NotImplementedError in the reference;
    # subclasses with a different residual/reduction need their own hot path.

    def __init__(self, weight: float = 1.0, derivative_order: int = 0,
                 log_clip_value: float | None = None) -> None:
        self.weight = float(weight)
        self.derivative_order = derivative_order      # stored, unused in fwd
        self.log_clip_value = (None if log_clip_value is None
                               else float(log_clip_value))

    def __call__(self, pred: jax.Array, target: jax.Array) -> jax.Array:
        assert pred.shape == target.shape
        total = pred.size
        itemsize = jnp.dtype(pred.dtype).itemsize

        rows = max(1, _round_up(total, LANES) // LANES)
        block_rows = _choose_block_rows(rows, itemsize)
        # Split the reduction into 2 independent halves when there is enough
        # work: a plain sequential outer loop on single-TC v5e/v6e, up to ~2x
        # on dual-TC v7x via the 'parallel' grid axis.
        nsplit = 2 if rows >= 2 * block_rows else 1
        steps = _round_up(rows, block_rows * nsplit) // (block_rows * nsplit)
        rows_padded = steps * block_rows * nsplit
        padded_total = rows_padded * LANES

        p = pred.reshape(-1)
        t = target.reshape(-1)
        if padded_total != total:
            # Zero-pad BOTH operands: padded residuals are exactly zero, so the
            # sum is unbiased; the mean divides by the TRUE count below.
            p = jnp.pad(p, (0, padded_total - total))
            t = jnp.pad(t, (0, padded_total - total))
        p2 = p.reshape(rows_padded, LANES)
        t2 = t.reshape(rows_padded, LANES)

        def in_map(s, i):
            return (s * steps + i, 0)

        cost = pl.CostEstimate(
            flops=3 * padded_total,
            transcendentals=0,
            bytes_accessed=2 * padded_total * itemsize
                           + nsplit * SUBLANES * LANES * 4,
        )

        partials = pl.pallas_call(
            _sumsq_kernel,
            out_shape=jax.ShapeDtypeStruct((nsplit, SUBLANES, LANES),
                                           jnp.float32),
            grid_spec=pltpu.PrefetchScalarGridSpec(
                num_scalar_prefetch=0,
                grid=(nsplit, steps),
                in_specs=[
                    pl.BlockSpec((block_rows, LANES), in_map),
                    pl.BlockSpec((block_rows, LANES), in_map),
                ],
                out_specs=pl.BlockSpec((1, SUBLANES, LANES),
                                       lambda s, i: (s, 0, 0)),
            ),
            compiler_params=pltpu.CompilerParams(
                dimension_semantics=("parallel", "arbitrary"),
            ),
            cost_estimate=cost,
        )(p2, t2)

        # Tiny epilogue over at most 2*8*128 floats: final cross-lane reduce,
        # weight scaling, true-count mean, optional log-clip (BaseLoss contract).
        loss = jnp.sum(partials) * jnp.float32(self.weight / total)
        if self.log_clip_value is not None:
            loss = jnp.log(jnp.maximum(loss, jnp.float32(self.log_clip_value)))
        return loss


def _reference(pred, target, weight, log_clip_value):
    loss = weight * jnp.mean((pred.astype(jnp.float32)
                              - target.astype(jnp.float32)) ** 2)
    if log_clip_value is not None:
        loss = jnp.log(jnp.maximum(loss, log_clip_value))
    return loss


if __name__ == "__main__":
    key = jax.random.PRNGKey(0)
    k1, k2, k3, k4 = jax.random.split(key, 4)

    # small shapes consistent with a loss over NCHW activations
    B, C, H, W = 2, 4, 16, 16
    pred = jax.random.normal(k1, (B, C, H, W), dtype=jnp.float32)
    target = jax.random.normal(k2, (B, C, H, W), dtype=jnp.float32)

    loss_fn = BaseLossPallas(weight=2.0, derivative_order=0,
                             log_clip_value=1e-8)
    loss = loss_fn(pred, target)
    jax.block_until_ready(loss)
    ref = _reference(pred, target, 2.0, 1e-8)
    assert jnp.allclose(loss, ref, rtol=1e-5, atol=1e-6), (loss, ref)

    # ragged (non multiple-of-128) case exercises the unbiased zero-pad path
    pred2 = jax.random.normal(k3, (3, 5, 7), dtype=jnp.float32)
    target2 = jax.random.normal(k4, (3, 5, 7), dtype=jnp.float32)
    loss_fn2 = BaseLossPallas(weight=0.5)
    loss2 = loss_fn2(pred2, target2)
    jax.block_until_ready(loss2)
    ref2 = _reference(pred2, target2, 0.5, None)
    assert jnp.allclose(loss2, ref2, rtol=1e-5, atol=1e-6), (loss2, ref2)

    print("KERNEL_OK")
</pallas_src>

<mosaic_0001>
module attributes {stable_mosaic.version = 11 : i64} {
  func.func @_sumsq_kernel(%arg0: i32, %arg1: i32, %arg2: memref<16x128xf32, #tpu.memory_space<vmem>>, %arg3: memref<16x128xf32, #tpu.memory_space<vmem>>, %arg4: memref<1x8x128xf32, #tpu.memory_space<vmem>>) attributes {dimension_semantics = [#tpu.dimension_semantics<parallel>, #tpu.dimension_semantics<arbitrary>], iteration_bounds = array<i64: 1, 1>, scalar_prefetch = 0 : i64, scratch_operands = 0 : i64, tpu.core_type = #tpu.core_type<tc>, window_params = [{transform_indices = @transform_0, window_bounds = array<i64: 16, 128>}, {transform_indices = @transform_1, window_bounds = array<i64: 16, 128>}, {transform_indices = @transform_2, window_bounds = array<i64: 1, 8, 128>}]} {
    %c0_i32 = arith.constant 0 : i32
    %0 = arith.cmpi eq, %arg1, %c0_i32 : i32
    %1 = arith.extui %0 : i1 to i32
    %c0_i32_0 = arith.constant 0 : i32
    %2 = arith.cmpi ne, %1, %c0_i32_0 : i32
    scf.if %2 {
      %cst_10 = arith.constant 0.000000e+00 : f32
      %13 = vector.broadcast %cst_10 : f32 to vector<1x8x128xf32>
      %c0_11 = arith.constant 0 : index
      %c0_12 = arith.constant 0 : index
      %c0_13 = arith.constant 0 : index
      %14 = vector.load %arg4[%c0_11, %c0_12, %c0_13] : memref<1x8x128xf32, #tpu.memory_space<vmem>>, vector<1x8x128xf32>
      tpu.vector_store %arg4[%c0_11, %c0_12, %c0_13], %13 {strides = array<i32>} : memref<1x8x128xf32, #tpu.memory_space<vmem>>, vector<1x8x128xf32>,
    } else {
    }
    %c0 = arith.constant 0 : index
    %c0_1 = arith.constant 0 : index
    %3 = vector.load %arg2[%c0, %c0_1] : memref<16x128xf32, #tpu.memory_space<vmem>>, vector<16x128xf32>
    %c0_2 = arith.constant 0 : index
    %c0_3 = arith.constant 0 : index
    %4 = vector.load %arg3[%c0_2, %c0_3] : memref<16x128xf32, #tpu.memory_space<vmem>>, vector<16x128xf32>
    %5 = arith.subf %3, %4 : vector<16x128xf32>
    %6 = arith.mulf %5, %5 : vector<16x128xf32>
    %7 = vector.shape_cast %6 : vector<16x128xf32> to vector<2x8x128xf32>
    %cst = arith.constant dense<0.000000e+00> : vector<8x128xf32>
    %8 = vector.multi_reduction <add>, %7, %cst [0] : vector<2x8x128xf32> to vector<8x128xf32>
    %c0_4 = arith.constant 0 : index
    %c0_5 = arith.constant 0 : index
    %c0_6 = arith.constant 0 : index
    %9 = vector.load %arg4[%c0_4, %c0_5, %c0_6] : memref<1x8x128xf32, #tpu.memory_space<vmem>>, vector<1x8x128xf32>
    %10 = vector.shape_cast %8 : vector<8x128xf32> to vector<1x8x128xf32>
    %11 = arith.addf %9, %10 : vector<1x8x128xf32>
    %c0_7 = arith.constant 0 : index
    %c0_8 = arith.constant 0 : index
    %c0_9 = arith.constant 0 : index
    %12 = vector.load %arg4[%c0_7, %c0_8, %c0_9] : memref<1x8x128xf32, #tpu.memory_space<vmem>>, vector<1x8x128xf32>
    tpu.vector_store %arg4[%c0_7, %c0_8, %c0_9], %11 {strides = array<i32>} : memref<1x8x128xf32, #tpu.memory_space<vmem>>, vector<1x8x128xf32>,
    return
  }
  func.func @transform_0(%arg0: i32, %arg1: i32) -> (i32, i32) {
    %c1_i32 = arith.constant 1 : i32
    %0 = arith.muli %arg0, %c1_i32 : i32
    %1 = arith.addi %0, %arg1 : i32
    %c0_i32 = arith.constant 0 : i32
    %c0_i32_0 = arith.constant 0 : i32
    return %1, %c0_i32 : i32, i32
  }
  func.func @transform_1(%arg0: i32, %arg1: i32) -> (i32, i32) {
    %c1_i32 = arith.constant 1 : i32
    %0 = arith.muli %arg0, %c1_i32 : i32
    %1 = arith.addi %0, %arg1 : i32
    %c0_i32 = arith.constant 0 : i32
    %c0_i32_0 = arith.constant 0 : i32
    return %1, %c0_i32 : i32, i32
  }
  func.func @transform_2(%arg0: i32, %arg1: i32) -> (i32, i32, i32) {
    %c0_i32 = arith.constant 0 : i32
    %c0_i32_0 = arith.constant 0 : i32
    %c0_i32_1 = arith.constant 0 : i32
    return %arg0, %c0_i32, %c0_i32_0 : i32, i32, i32
  }
}

</mosaic_0001>

<bundles_post_ra>
// kernel: tpu_custom_call.1
= control target key start
LH: loop header
LB: loop body
LE: loop exit
PB: predicated region body
PF: predicated region fallthrough
CT: control target
= control target key end

     0   :  { %7 = vsyncpa [#allocation3], 0  ;;  %s219_s0 = inlined_call_operand.hbm [shape: f32[16,128], index: 0, kind: input, shape index: {}]   ;;  %s220_s1 = inlined_call_operand.hbm [shape: f32[16,128], index: 1, kind: input, shape index: {}]   ;;  %s221_s2 = inlined_call_operand.hbm [shape: f32[1,8,128], index: 2, kind: output, shape index: {}]  }
   0x1   :  { %8 = vsyncpa [#allocation6], 0 }
   0x2   :  { %9 = vsyncpa [#allocation4], 0  ;;  %s163_s9 = smov [#allocation2]   ;;  %s91_s13 = scalar_lea.hbm %s219_s0, 256 }
   0x3   :  { %s19_s10 = sshll.u32 %s163_s9, 4  ;;  %p92_p0 = scmp.ne.s32.totalorder %s219_s0, %s91_s13  ;;  %s20_s10 = int_to_ptr.vmem [resolvable:$true] %s19_s10 }
   0x4   :  { %p95_p1 = scmp.lt.u32.totalorder %s91_s13, %s219_s0 }
   0x6   :  { %p97_p2 = pnand %p95_p1, %p92_p0 }
   0x8   :  { %100 = shalt.err (!%p97_p2)
}
   0x9   :  { %s101_s18 = scalar_lea.vmem %s20_s10, 256  ;;  %p106_p4 = scmp.lt.s32.totalorder %s20_s10, %s20_s10 }
   0xa   :  { %p102_p3 = scmp.ne.s32.totalorder %s20_s10, %s101_s18  ;;  %p107_p5 = scmp.lt.s32.totalorder %s101_s18, %s101_s18 }
   0xc   :  { %p108_p6 = por %p107_p5, %p106_p4 }
   0xe   :  { %p109_p7 = pnand %p108_p6, %p102_p3 }
  0x10   :  { %112 = shalt.err (!%p109_p7)
}
  0x11   :  { %s164_s19 = smov 128   ;;  %s165_s20 = smov 8  }
  0x12   :  { %25 = dma.hbm_to_vmem [thread:$0]  %s219_s0, 256, %s20_s10, [#allocation3], %s164_s19, %s164_s19, %s165_s20  }
  0x13   :  { %s166_s23 = smov [#allocation5]   ;;  %s113_s27 = scalar_lea.hbm %s220_s1, 256 }
  0x14   :  { %s35_s24 = sshll.u32 %s166_s23, 4  ;;  %p114_p8 = scmp.ne.s32.totalorder %s220_s1, %s113_s27  ;;  %s36_s24 = int_to_ptr.vmem [resolvable:$true] %s35_s24 }
  0x15   :  { %p117_p9 = scmp.lt.u32.totalorder %s113_s27, %s220_s1 }
  0x17   :  { %p119_p10 = pnand %p117_p9, %p114_p8 }
  0x19   :  { %122 = shalt.err (!%p119_p10)
}
  0x1a   :  { %s123_s4 = scalar_lea.vmem %s36_s24, 256  ;;  %p128_p12 = scmp.lt.s32.totalorder %s36_s24, %s36_s24 }
  0x1b   :  { %p124_p11 = scmp.ne.s32.totalorder %s36_s24, %s123_s4  ;;  %p129_p13 = scmp.lt.s32.totalorder %s123_s4, %s123_s4 }
  0x1d   :  { %p130_p0 = por %p129_p13, %p128_p12 }
  0x1f   :  { %p131_p1 = pnand %p130_p0, %p124_p11 }
  0x21   :  { %134 = shalt.err (!%p131_p1)
}
  0x22   :  { %41 = dma.hbm_to_vmem [thread:$0]  %s220_s1, 256, %s36_s24, [#allocation6], %s164_s19, %s164_s19, %s165_s20  }
  0x23   :  { %157 = dma.done.wait [#allocation3], 256  }
  0x24   :  { %158 = vsyncadd [#allocation3], 4294967040 }
  0x25   :  { %159 = dma.done.wait [#allocation6], 256  }
  0x26   :  { %160 = vsyncadd [#allocation6], 4294967040  ;;  %v57_v0 = vld [vmem:[#allocation2] sm:$0xff]  ;;  %v58_v1 = vld [vmem:[#allocation2 + $0x8] sm:$0xff]  ;;  %s167_s6 = smov [#allocation7]  }
  0x27   :  { %v59_v2 = vld [vmem:[#allocation5] sm:$0xff]  ;;  %v60_v3 = vld [vmem:[#allocation5 + $0x8] sm:$0xff]  ;;  %s75_s7 = sshll.u32 %s167_s6, 4  ;;  %s76_s7 = int_to_ptr.vmem [resolvable:$true] %s75_s7 }
  0x28   :  { %v61_v4 = vsub.f32 %v57_v0, %v59_v2  ;;  %v62_v5 = vsub.f32 %v58_v1, %v60_v3  ;;  %s135_s8 = scalar_lea.vmem %s76_s7, 128  ;;  %p140_p3 = scmp.lt.s32.totalorder %s76_s7, %s76_s7 }
  0x29   :  { %p136_p2 = scmp.ne.s32.totalorder %s76_s7, %s135_s8  ;;  %p141_p4 = scmp.lt.s32.totalorder %s135_s8, %s135_s8 }
  0x2a   :  { %v63_v6 = vmul.f32 %v61_v4, %v61_v4  ;;  %v64_v7 = vmul.f32 %v62_v5, %v62_v5 }
  0x2b   :  { %p142_p5 = por %p141_p4, %p140_p3 }
  0x2c   :  { %v65_v8 = vadd.f32 %v64_v7, %v63_v6 }
  0x2d   :  { %p143_p6 = pnand %p142_p5, %p136_p2 }
  0x2e   :  { %68 = vst [vmem:[#allocation7] sm:$0xff] %v65_v8 }
  0x2f   :  { %146 = shalt.err (!%p143_p6)
}
  0x30   :  { %s147_s10 = scalar_lea.hbm %s221_s2, 128 }
  0x31   :  { %p148_p7 = scmp.ne.s32.totalorder %s221_s2, %s147_s10  ;;  %p151_p8 = scmp.lt.u32.totalorder %s147_s10, %s221_s2 }
  0x33   :  { %p153_p9 = pnand %p151_p8, %p148_p7 }
  0x35   :  { %156 = shalt.err (!%p153_p9)
}
  0x36   :  { %78 = dma.vmem_to_hbm [thread:$0]  %s76_s7, 128, %s221_s2, [#allocation4]  }
  0x37   :  { %161 = dma.done.wait [#allocation4], 128  }
  0x38   :  { %162 = vsyncadd [#allocation4], 4294967168 }
  0x39   :  { %82 = vsyncpa [#allocation3], 1 }
  0x3a   :  { %83 = vsyncpa [#allocation6], 1 }
  0x3b   :  { %84 = vsyncpa [#allocation4], 1 }

</bundles_post_ra>
